<compile_context>
chip_gen: v6e
topology: v6e:2x2x1
jax: 0.10.0
libtpu: 0.0.40
codegen_flags: <defaults>
</compile_context>

<pallas_src>
import functools
import inspect

import jax
import jax.numpy as jnp
from jax import lax
from jax.experimental import pallas as pl
from jax.experimental.pallas import tpu as pltpu

_HIGHEST = lax.Precision.HIGHEST

_FUSE_MAX_ROWS = 256            # tables up to this many rows -> fused on-chip gather
_ONEHOT_BUDGET = 6 << 20        # bytes of in-kernel one-hot masks allowed per tile
_UNFUSED_VMEM_BUDGET = 8 << 20  # live VMEM budget for the unfused input tiles


def _round_up(x, m):
    return (x + m - 1) // m * m


def _supports_buffered():
    if not hasattr(pl, "Buffered"):
        return False
    try:
        return "pipeline_mode" in inspect.signature(pl.BlockSpec).parameters
    except (TypeError, ValueError):
        return False


_HAS_BUFFERED = _supports_buffered()


def _block_spec(shape, index_map, *, buffers=None):
    """BlockSpec with optional deeper input buffering (small, cheap win when
    per-step compute cannot hide the DMA)."""
    if buffers is not None and _HAS_BUFFERED:
        return pl.BlockSpec(shape, index_map, pipeline_mode=pl.Buffered(buffers))
    return pl.BlockSpec(shape, index_map)


def _choose_tile(B, tb_max, quantum):
    """Batch tile: multiple of `quantum`, capped at tb_max, and (for large B)
    small enough to give >=4 grid steps so v7x megacore keeps >=2 steps/TC."""
    tb = min(tb_max, _round_up(B, quantum))
    if B > 2 * quantum:
        tb = min(tb, _round_up(pl.cdiv(B, 4), quantum))
    tb = max(quantum, (tb // quantum) * quantum)
    Bp = _round_up(B, tb)
    return tb, Bp, Bp // tb


# --------------------------------------------------------------------------
# Kernels
# --------------------------------------------------------------------------
def _mf_fused_kernel(uidx_ref, midx_ref, utab_ref, mtab_ref, out_ref, *, apply_relu):
    """Fully fused MF forward (gather + dot + bias + relu) for small tables.

    uidx_ref, midx_ref : (1, tb)     int32  lane-dense index tiles
    utab_ref           : (d+2, U)    f32    [emb.T ; user_bias ; ones]   (VMEM-resident)
    mtab_ref           : (d+2, M)    f32    [emb.T ; ones ; mission_bias](VMEM-resident)
    out_ref            : (1, tb)     f32    lane-dense scores
    """
    uidx = uidx_ref[...]
    midx = midx_ref[...]
    num_u = utab_ref.shape[1]
    num_m = mtab_ref.shape[1]
    tb = uidx.shape[1]

    # One-hot row-selection masks; samples stay on the lane axis throughout,
    # so no cross-lane relayouts are ever needed.
    oh_u = (lax.broadcasted_iota(jnp.int32, (num_u, tb), 0) == uidx).astype(jnp.float32)
    oh_m = (lax.broadcasted_iota(jnp.int32, (num_m, tb), 0) == midx).astype(jnp.float32)

    def gather(tab, oh):  # (d+2, rows) @ (rows, tb) -> (d+2, tb) on the MXU
        return lax.dot_general(tab, oh, (((1,), (0,)), ((), ())),
                               precision=_HIGHEST,
                               preferred_element_type=jnp.float32)

    # Bias rows are folded into the augmented tables, so the elementwise
    # product already contains ue*me plus ub*1 and 1*mb rows.
    prod = gather(utab_ref[...], oh_u) * gather(mtab_ref[...], oh_m)   # (d+2, tb)

    ones = jnp.ones((8, prod.shape[0]), jnp.float32)
    acc = lax.dot_general(ones, prod, (((1,), (0,)), ((), ())),
                          precision=_HIGHEST,
                          preferred_element_type=jnp.float32)          # (8, tb)
    s = acc[0:1, :]
    if apply_relu:
        s = jnp.maximum(s, 0.0)
    out_ref[...] = s


def _mf_packed_kernel(ue_ref, me_ref, bias_ref, out_ref, *, d, apply_relu):
    """Unfused path, lane-packed layout (requires 128 % d == 0).

    ue_ref/me_ref : (r_t, 128) f32  -- each row holds g = 128/d samples, lane-dense
    bias_ref/out  : (g, r_t)   f32  -- lane-dense along the packed rows
    """
    g = 128 // d
    prod = ue_ref[...] * me_ref[...]                              # (r_t, 128)
    lane = lax.broadcasted_iota(jnp.int32, (g, 128), 1)
    grp = lax.broadcasted_iota(jnp.int32, (g, 128), 0)
    sel = ((lane // d) == grp).astype(jnp.float32)                # (g, 128) selector
    dots = lax.dot_general(sel, prod, (((1,), (1,)), ((), ())),
                           precision=_HIGHEST,
                           preferred_element_type=jnp.float32)    # (g, r_t)
    s = dots + bias_ref[...]
    if apply_relu:
        s = jnp.maximum(s, 0.0)
    out_ref[...] = s


def _mf_rowmajor_kernel(ue_ref, me_ref, bias_ref, out_ref, *, apply_relu):
    """Unfused fallback when d does not divide 128 (lane-padded minor dim).

    ue_ref/me_ref : (tb, d) f32 ; bias_ref/out_ref : (1, tb) f32 lane-dense
    """
    prod = ue_ref[...] * me_ref[...]                              # (tb, d)
    ones = jnp.ones((8, prod.shape[1]), jnp.float32)
    acc = lax.dot_general(ones, prod, (((1,), (1,)), ((), ())),
                          precision=_HIGHEST,
                          preferred_element_type=jnp.float32)     # (8, tb)
    s = acc[0:1, :] + bias_ref[...]
    if apply_relu:
        s = jnp.maximum(s, 0.0)
    out_ref[...] = s


# --------------------------------------------------------------------------
# Wrapper
# --------------------------------------------------------------------------
def mf_forward(params, user, mission, *, training=False, force_unfused=False):
    """params = dict(user_emb, mission_emb, user_bias, mission_bias)."""
    user = jnp.asarray(user, jnp.int32)
    mission = jnp.asarray(mission, jnp.int32)
    B = user.shape[0]

    uemb = params["user_emb"].astype(jnp.float32)
    memb = params["mission_emb"].astype(jnp.float32)
    ubias = params["user_bias"].astype(jnp.float32)
    mbias = params["mission_bias"].astype(jnp.float32)
    num_u, d = uemb.shape
    num_m = memb.shape[0]
    apply_relu = not training

    cparams = pltpu.CompilerParams(
        dimension_semantics=("parallel",),
        vmem_limit_bytes=32 * 1024 * 1024,  # safe on v5e/v6e/v7x physical VMEM
    )

    fuse = (not force_unfused) and num_u <= _FUSE_MAX_ROWS and num_m <= _FUSE_MAX_ROWS

    if fuse:
        # -------- fused path: on-chip gather, no (B, d) HBM intermediates --------
        tb_cap = max(128, (_ONEHOT_BUDGET // (4 * (num_u + num_m))) // 128 * 128)
        tb, Bp, grid = _choose_tile(B, min(8192, tb_cap), 128)
        bufs = 3 if grid > 2 else None

        pad = Bp - B
        uidx = (jnp.pad(user, (0, pad)) if pad else user).reshape(1, Bp)
        midx = (jnp.pad(mission, (0, pad)) if pad else mission).reshape(1, Bp)
        # Padded tail uses index 0 (always a valid row); results sliced off below.

        # Augmented, transposed tables: rows = [emb dims ; bias ; ones] so the
        # elementwise product of the two gathered columns sums to ue.me+ub+mb.
        uaug = jnp.concatenate(
            [uemb.T, ubias.reshape(1, num_u), jnp.ones((1, num_u), jnp.float32)],
            axis=0)                                               # (d+2, U)
        maug = jnp.concatenate(
            [memb.T, jnp.ones((1, num_m), jnp.float32), mbias.reshape(1, num_m)],
            axis=0)                                               # (d+2, M)

        kern = functools.partial(_mf_fused_kernel, apply_relu=apply_relu)
        out = pl.pallas_call(
            kern,
            out_shape=jax.ShapeDtypeStruct((1, Bp), jnp.float32),
            grid_spec=pltpu.PrefetchScalarGridSpec(
                num_scalar_prefetch=0,
                grid=(grid,),
                in_specs=[
                    _block_spec((1, tb), lambda i: (0, i), buffers=bufs),
                    _block_spec((1, tb), lambda i: (0, i), buffers=bufs),
                    # constant block index -> fetched once, VMEM-resident
                    pl.BlockSpec((d + 2, num_u), lambda i: (0, 0)),
                    pl.BlockSpec((d + 2, num_m), lambda i: (0, 0)),
                ],
                out_specs=pl.BlockSpec((1, tb), lambda i: (0, i)),
            ),
            compiler_params=cparams,
        )(uidx, midx, uaug, maug)
        return out[0, :B]

    # -------- unfused fallback (large tables): XLA gather + Pallas reduce --------
    packed = d <= 128 and (128 % d == 0)
    if packed:
        q = max(1024, 16384 // d)                 # keeps all block dims (8,128)-legal
        tb_budget = max(q, (_UNFUSED_VMEM_BUDGET // (24 * d)) // q * q)
        tb, Bp, grid = _choose_tile(B, max(8192, q) if tb_budget >= 8192 else tb_budget, q)
    else:
        row_bytes = _round_up(d, 128) * 4         # lane-padded row
        tb_cap = max(128, (_UNFUSED_VMEM_BUDGET // (6 * row_bytes)) // 128 * 128)
        tb, Bp, grid = _choose_tile(B, tb_cap, 128)
    bufs = 3 if grid > 2 else None

    pad = Bp - B
    user_p = jnp.pad(user, (0, pad)) if pad else user
    mission_p = jnp.pad(mission, (0, pad)) if pad else mission

    ue = jnp.take(uemb, user_p, axis=0)                     # (Bp, d)
    me = jnp.take(memb, mission_p, axis=0)                  # (Bp, d)
    bias = (jnp.take(ubias[:, 0], user_p, axis=0)
            + jnp.take(mbias[:, 0], mission_p, axis=0))     # (Bp,)

    kern_relu = apply_relu

    if packed:
        g = 128 // d
        rows = Bp // g                                       # == Bp * d // 128
        r_t = tb // g
        ue_pk = ue.reshape(rows, 128)                        # free contiguous views
        me_pk = me.reshape(rows, 128)
        bias_lane = bias.reshape(rows, g).T                  # (g, rows) lane-dense
        kern = functools.partial(_mf_packed_kernel, d=d, apply_relu=kern_relu)
        out = pl.pallas_call(
            kern,
            out_shape=jax.ShapeDtypeStruct((g, rows), jnp.float32),
            grid_spec=pltpu.PrefetchScalarGridSpec(
                num_scalar_prefetch=0,
                grid=(grid,),
                in_specs=[
                    _block_spec((r_t, 128), lambda i: (i, 0), buffers=bufs),
                    _block_spec((r_t, 128), lambda i: (i, 0), buffers=bufs),
                    pl.BlockSpec((g, r_t), lambda i: (0, i)),
                ],
                out_specs=pl.BlockSpec((g, r_t), lambda i: (0, i)),
            ),
            compiler_params=cparams,
        )(ue_pk, me_pk, bias_lane)
        return out.T.reshape(-1)[:B]

    # d does not divide 128: keep d as the (lane-padded) minor dim.
    bias_row = bias.reshape(1, Bp)
    kern = functools.partial(_mf_rowmajor_kernel, apply_relu=kern_relu)
    out = pl.pallas_call(
        kern,
        out_shape=jax.ShapeDtypeStruct((1, Bp), jnp.float32),
        grid_spec=pltpu.PrefetchScalarGridSpec(
            num_scalar_prefetch=0,
            grid=(grid,),
            in_specs=[
                _block_spec((tb, d), lambda i: (i, 0), buffers=bufs),
                _block_spec((tb, d), lambda i: (i, 0), buffers=bufs),
                pl.BlockSpec((1, tb), lambda i: (0, i)),
            ],
            out_specs=pl.BlockSpec((1, tb), lambda i: (0, i)),
        ),
        compiler_params=cparams,
    )(ue, me, bias_row)
    return out[0, :B]


# --------------------------------------------------------------------------
# Init + reference
# --------------------------------------------------------------------------
def init_mf_params(key, num_users, num_missions, embedding_dim):
    """Matches the PyTorch module: xavier_uniform_ embeddings, zero biases."""
    k_u, k_m = jax.random.split(key)

    def xavier_uniform(k, shape):
        fan_out, fan_in = shape
        bound = (6.0 / (fan_in + fan_out)) ** 0.5
        return jax.random.uniform(k, shape, jnp.float32, -bound, bound)

    return {
        "user_emb": xavier_uniform(k_u, (num_users, embedding_dim)),
        "mission_emb": xavier_uniform(k_m, (num_missions, embedding_dim)),
        "user_bias": jnp.zeros((num_users, 1), jnp.float32),
        "mission_bias": jnp.zeros((num_missions, 1), jnp.float32),
    }


def _mf_reference(params, user, mission, training=False):
    ue = params["user_emb"][user]
    me = params["mission_emb"][mission]
    ub = params["user_bias"][user]
    mb = params["mission_bias"][mission]
    dot = (jnp.sum(ue * me, axis=1, keepdims=True) + ub + mb).reshape(-1)
    return dot if training else jnp.maximum(dot, 0.0)


# --------------------------------------------------------------------------
# Demo / self-test
# --------------------------------------------------------------------------
if __name__ == "__main__":
    key = jax.random.PRNGKey(0)
    k_params, k_ub, k_mb = jax.random.split(key, 3)

    num_users, num_missions, embedding_dim = 64, 48, 32
    params = init_mf_params(k_params, num_users, num_missions, embedding_dim)
    # Non-zero biases so they actually affect the output.
    params["user_bias"] = 0.1 * jax.random.normal(k_ub, (num_users, 1), jnp.float32)
    params["mission_bias"] = 0.1 * jax.random.normal(k_mb, (num_missions, 1), jnp.float32)

    def check(p, batch, *, training, force_unfused, seed):
        ku, km = jax.random.split(jax.random.PRNGKey(seed))
        nu = p["user_emb"].shape[0]
        nm = p["mission_emb"].shape[0]
        user = jax.random.randint(ku, (batch,), 0, nu, dtype=jnp.int32)
        mission = jax.random.randint(km, (batch,), 0, nm, dtype=jnp.int32)
        out = jax.block_until_ready(
            mf_forward(p, user, mission, training=training,
                       force_unfused=force_unfused))
        ref = _mf_reference(p, user, mission, training=training)
        assert out.shape == (batch,), out.shape
        assert jnp.allclose(out, ref, atol=3e-5, rtol=3e-5), \
            float(jnp.max(jnp.abs(out - ref)))

    # Fused (on-chip gather) path: small eval batch, then a padded multi-tile
    # training-mode batch (no relu, grid >= 4, VMEM-resident tables).
    check(params, 8, training=False, force_unfused=False, seed=1)
    check(params, 1000, training=True, force_unfused=False, seed=2)

    # Unfused fallback, lane-packed (d | 128) layout, multi-step grid.
    check(params, 3000, training=False, force_unfused=True, seed=3)

    # Unfused fallback where d does not divide 128.
    params40 = init_mf_params(jax.random.PRNGKey(7), 32, 16, 40)
    params40["user_bias"] = 0.1 * jax.random.normal(jax.random.PRNGKey(8), (32, 1), jnp.float32)
    params40["mission_bias"] = 0.1 * jax.random.normal(jax.random.PRNGKey(9), (16, 1), jnp.float32)
    check(params40, 64, training=False, force_unfused=True, seed=4)

    print("KERNEL_OK")
</pallas_src>

<mosaic_0001>
module attributes {stable_mosaic.version = 11 : i64} {
  func.func @_mf_fused_kernel(%arg0: i32, %arg1: memref<1x128xi32, #tpu.memory_space<vmem>>, %arg2: memref<1x128xi32, #tpu.memory_space<vmem>>, %arg3: memref<34x64xf32, #tpu.memory_space<vmem>>, %arg4: memref<34x48xf32, #tpu.memory_space<vmem>>, %arg5: memref<1x128xf32, #tpu.memory_space<vmem>>) attributes {dimension_semantics = [#tpu.dimension_semantics<parallel>], iteration_bounds = array<i64: 1>, scalar_prefetch = 0 : i64, scratch_operands = 0 : i64, tpu.core_type = #tpu.core_type<tc>, window_params = [{transform_indices = @transform_0, window_bounds = array<i64: 1, 128>}, {transform_indices = @transform_1, window_bounds = array<i64: 1, 128>}, {pipeline_mode = #tpu.pipeline_mode<synchronous>, transform_indices = @transform_2, window_bounds = array<i64: 34, 64>}, {pipeline_mode = #tpu.pipeline_mode<synchronous>, transform_indices = @transform_3, window_bounds = array<i64: 34, 48>}, {transform_indices = @transform_4, window_bounds = array<i64: 1, 128>}]} {
    %c0 = arith.constant 0 : index
    %c0_0 = arith.constant 0 : index
    %0 = vector.load %arg1[%c0, %c0_0] : memref<1x128xi32, #tpu.memory_space<vmem>>, vector<1x128xi32>
    %c0_1 = arith.constant 0 : index
    %c0_2 = arith.constant 0 : index
    %1 = vector.load %arg2[%c0_1, %c0_2] : memref<1x128xi32, #tpu.memory_space<vmem>>, vector<1x128xi32>
    %2 = tpu.iota {dimensions = array<i32: 0>} : vector<64x128xi32>
    %3 = vector.broadcast %0 : vector<1x128xi32> to vector<64x128xi32>
    %4 = arith.cmpi eq, %2, %3 : vector<64x128xi32>
    %5 = arith.extui %4 : vector<64x128xi1> to vector<64x128xi32>
    %6 = arith.sitofp %5 : vector<64x128xi32> to vector<64x128xf32>
    %7 = tpu.iota {dimensions = array<i32: 0>} : vector<48x128xi32>
    %8 = vector.broadcast %1 : vector<1x128xi32> to vector<48x128xi32>
    %9 = arith.cmpi eq, %7, %8 : vector<48x128xi32>
    %10 = arith.extui %9 : vector<48x128xi1> to vector<48x128xi32>
    %11 = arith.sitofp %10 : vector<48x128xi32> to vector<48x128xf32>
    %c0_3 = arith.constant 0 : index
    %c0_4 = arith.constant 0 : index
    %12 = vector.load %arg3[%c0_3, %c0_4] : memref<34x64xf32, #tpu.memory_space<vmem>>, vector<34x64xf32>
    %cst = arith.constant dense<0.000000e+00> : vector<34x128xf32>
    %13 = tpu.matmul %12, %6, %cst {dimension_numbers = #tpu.dot_dimension_numbers<[1], [0], [0], [1], [0, 0, 1, 1], [], []>, precision = #tpu.contract_precision<fp32>} : vector<34x64xf32>, vector<64x128xf32>, vector<34x128xf32> -> vector<34x128xf32>
    %c0_5 = arith.constant 0 : index
    %c0_6 = arith.constant 0 : index
    %14 = vector.load %arg4[%c0_5, %c0_6] : memref<34x48xf32, #tpu.memory_space<vmem>>, vector<34x48xf32>
    %cst_7 = arith.constant dense<0.000000e+00> : vector<34x128xf32>
    %15 = tpu.matmul %14, %11, %cst_7 {dimension_numbers = #tpu.dot_dimension_numbers<[1], [0], [0], [1], [0, 0, 1, 1], [], []>, precision = #tpu.contract_precision<fp32>} : vector<34x48xf32>, vector<48x128xf32>, vector<34x128xf32> -> vector<34x128xf32>
    %16 = arith.mulf %13, %15 : vector<34x128xf32>
    %cst_8 = arith.constant 1.000000e+00 : f32
    %17 = vector.broadcast %cst_8 : f32 to vector<8x34xf32>
    %cst_9 = arith.constant dense<0.000000e+00> : vector<8x128xf32>
    %18 = tpu.matmul %17, %16, %cst_9 {dimension_numbers = #tpu.dot_dimension_numbers<[1], [0], [0], [1], [0, 0, 1, 1], [], []>, precision = #tpu.contract_precision<fp32>} : vector<8x34xf32>, vector<34x128xf32>, vector<8x128xf32> -> vector<8x128xf32>
    %19 = vector.extract_strided_slice %18 {offsets = [0, 0], sizes = [1, 128], strides = [1, 1]} : vector<8x128xf32> to vector<1x128xf32>
    %cst_10 = arith.constant 0.000000e+00 : f32
    %20 = vector.broadcast %cst_10 : f32 to vector<1x128xf32>
    %21 = arith.maximumf %19, %20 : vector<1x128xf32>
    %c0_11 = arith.constant 0 : index
    %c0_12 = arith.constant 0 : index
    %22 = vector.load %arg5[%c0_11, %c0_12] : memref<1x128xf32, #tpu.memory_space<vmem>>, vector<1x128xf32>
    tpu.vector_store %arg5[%c0_11, %c0_12], %21 {strides = array<i32>} : memref<1x128xf32, #tpu.memory_space<vmem>>, vector<1x128xf32>,
    return
  }
  func.func @transform_0(%arg0: i32) -> (i32, i32) {
    %c0_i32 = arith.constant 0 : i32
    %c0_i32_0 = arith.constant 0 : i32
    return %c0_i32, %arg0 : i32, i32
  }
  func.func @transform_1(%arg0: i32) -> (i32, i32) {
    %c0_i32 = arith.constant 0 : i32
    %c0_i32_0 = arith.constant 0 : i32
    return %c0_i32, %arg0 : i32, i32
  }
  func.func @transform_2(%arg0: i32) -> (i32, i32) {
    %c0_i32 = arith.constant 0 : i32
    %c0_i32_0 = arith.constant 0 : i32
    %c0_i32_1 = arith.constant 0 : i32
    return %c0_i32, %c0_i32_0 : i32, i32
  }
  func.func @transform_3(%arg0: i32) -> (i32, i32) {
    %c0_i32 = arith.constant 0 : i32
    %c0_i32_0 = arith.constant 0 : i32
    %c0_i32_1 = arith.constant 0 : i32
    return %c0_i32, %c0_i32_0 : i32, i32
  }
  func.func @transform_4(%arg0: i32) -> (i32, i32) {
    %c0_i32 = arith.constant 0 : i32
    %c0_i32_0 = arith.constant 0 : i32
    return %c0_i32, %arg0 : i32, i32
  }
}

</mosaic_0001>

<bundles_post_ra>
// kernel: tpu_custom_call.1
= control target key start
LH: loop header
LB: loop body
LE: loop exit
PB: predicated region body
PF: predicated region fallthrough
CT: control target
= control target key end

     0   :  { %9 = vsyncpa [#allocation3], 0  ;;  %s3786_s0 = inlined_call_operand.hbm [shape: s32[1,128], index: 0, kind: input, shape index: {}]   ;;  %s3787_s1 = inlined_call_operand.vmem [shape: s32[1,128], index: 1, kind: input, shape index: {}]   ;;  %s3788_s2 = inlined_call_operand.hbm [shape: f32[34,64], index: 2, kind: input, shape index: {}]   ;;  %s3789_s3 = inlined_call_operand.hbm [shape: f32[34,48], index: 3, kind: input, shape index: {}]   ;;  %s3790_s4 = inlined_call_operand.hbm [shape: f32[1,128], index: 4, kind: output, shape index: {}]  }
   0x1   :  { %10 = vsyncpa [#allocation6], 0 }
   0x2   :  { %11 = vsyncpa [#allocation4], 0  ;;  %s2844_s15 = smov [#allocation5]  }
   0x3   :  { %s29_s16 = sshll.u32 %s2844_s15, 4  ;;  %s30_s16 = int_to_ptr.vmem [resolvable:$true] %s29_s16 }
   0x4   :  { %s2766_s17 = scalar_lea.vmem %s30_s16, 640  ;;  %p2771_p1 = scmp.lt.s32.totalorder %s30_s16, %s30_s16 }
   0x5   :  { %p2767_p0 = scmp.ne.s32.totalorder %s30_s16, %s2766_s17  ;;  %p2772_p2 = scmp.lt.s32.totalorder %s2766_s17, %s2766_s17 }
   0x7   :  { %p2773_p3 = por %p2772_p2, %p2771_p1 }
   0x9   :  { %p2774_p4 = pnand %p2773_p3, %p2767_p0 }
   0xb   :  { %2777 = shalt.err (!%p2774_p4)
}
   0xc   :  { %s2845_s18 = smov 128   ;;  %s2846_s19 = smov 8  }
   0xd   :  { %35 = dma.hbm_to_vmem [thread:$0]  %s3788_s2, 640, %s30_s16, [#allocation6], %s2845_s18, %s2845_s18, %s2846_s19  }
   0xe   :  { %s2847_s22 = smov [#allocation2]   ;;  %s2848_s24 = smov [#allocation7]  }
   0xf   :  { %s18_s23 = sshll.u32 %s2847_s22, 4  ;;  %s41_s25 = sshll.u32 %s2848_s24, 4  ;;  %s19_s23 = int_to_ptr.vmem [resolvable:$true] %s18_s23  ;;  %s42_s25 = int_to_ptr.vmem [resolvable:$true] %s41_s25 }
  0x10   :  { %s2786_s26 = scalar_lea.vmem %s19_s23, 16  ;;  %s2790_s27 = scalar_lea.vmem %s19_s23, 32 }
  0x11   :  { %p2787_p5 = scmp.ne.s32.totalorder %s19_s23, %s2786_s26  ;;  %p2791_p6 = scmp.lt.s32.totalorder %s19_s23, %s19_s23 }
  0x12   :  { %p2792_p7 = scmp.lt.s32.totalorder %s2790_s27, %s2786_s26 }
  0x14   :  { %p2793_p8 = por %p2792_p7, %p2791_p6 }
  0x16   :  { %p2794_p9 = pnand %p2793_p8, %p2787_p5 }
  0x18   :  { %2797 = shalt.err (!%p2794_p9)
}
  0x19   :  { %21 = dma.hbm_to_vmem [thread:$0]  %s3786_s0, 16, %s19_s23, [#allocation3]  }
  0x1a   :  { %s2806_s30 = scalar_lea.vmem %s42_s25, 640  ;;  %p2811_p11 = scmp.lt.s32.totalorder %s42_s25, %s42_s25 }
  0x1b   :  { %p2807_p10 = scmp.ne.s32.totalorder %s42_s25, %s2806_s30  ;;  %p2812_p12 = scmp.lt.s32.totalorder %s2806_s30, %s2806_s30 }
  0x1d   :  { %p2813_p13 = por %p2812_p12, %p2811_p11 }
  0x1f   :  { %p2814_p0 = pnand %p2813_p13, %p2807_p10 }
  0x21   :  { %2817 = shalt.err (!%p2814_p0)
}
  0x22   :  { %47 = dma.hbm_to_vmem [thread:$0]  %s3789_s3, 640, %s42_s25, [#allocation6], %s2845_s18, %s2845_s18, %s2846_s19  }
  0x23   :  { %2838 = dma.done.wait [#allocation3], 16  }
  0x24   :  { %2839 = vsyncadd [#allocation3], 4294967280 }
  0x25   :  { %2840 = dma.done.wait [#allocation6], 1280  }
  0x26   :  { %2841 = vsyncadd [#allocation6], 4294966016  ;;  %v59_v0 = vlaneseq  ;;  %v2849_v1 = vmov 0.0   ;;  %vm2850_vm0 = vmmov 0   ;;  %v2911_v8 = vld [vmem:[#allocation2] ss:$0 sm:$0xff] }
  0x27   :  { %2322 = vmatprep.subr.mxu0 %v2849_v1  ;;  %2353 = vmatprep.subr.mxu1 %v2849_v1  ;;  %vm123_vm1 = vcmask 523264   ;;  %v2851_v11 = vmov 1.0   ;;  %v118_v21 = vld [vmem:[#allocation5] sm:$0xff]  ;;  %v119_v28 = vld [vmem:[#allocation5 + $0x8] sm:$0xff]  ;;  %v120_v40 = vld [vmem:[#allocation5 + $0x10] sm:$0xff]  ;;  %vm853_vm10 = vcmask 392192  }
  0x28   :  { %v2890_v2 = vshrl.u32 %v59_v0, 7  ;;  %2338 = vmatprep.mubr.msk.f32.mxu0 %vm2850_vm0, %v2849_v1  ;;  %2369 = vmatprep.mubr.msk.f32.mxu1 %vm2850_vm0, %v2849_v1  ;;  %v125_v32 = vsel %vm123_vm1, %v118_v21, 0  ;;  %v128_v39 = vsel %vm123_vm1, %v119_v28, 0  ;;  %v121_v48 = vld [vmem:[#allocation5 + $0x18] sm:$0xff]  ;;  %v131_v52 = vsel %vm123_vm1, %v120_v40, 0 }
  0x29   :  { %v3007_v34 = vand.u32 4294901760, %v125_v32  ;;  %v3028_v43 = vand.u32 4294901760, %v128_v39  ;;  %v3049_v55 = vand.u32 4294901760, %v131_v52  ;;  %v122_v56 = vld [vmem:[#allocation5 + $0x20] sm:$0x3]  ;;  %v134_v60 = vsel %vm123_vm1, %v121_v48, 0 }
  0x2a   :  { %v2897_v3 = vadd.s32 56, %v2890_v2  ;;  %v2900_v4 = vadd.s32 48, %v2890_v2  ;;  %v2903_v5 = vadd.s32 40, %v2890_v2  ;;  %v2906_v6 = vadd.s32 32, %v2890_v2 }
  0x2b   :  { %v2909_v7 = vadd.s32 24, %v2890_v2  ;;  %v2914_v9 = vadd.s32 16, %v2890_v2  ;;  %v2917_v10 = vadd.s32 8, %v2890_v2  ;;  %vm72_vm9 = vcmp.eq.s32.totalorder %v2890_v2, %v2911_v8 }
  0x2c   :  { %vm79_vm2 = vcmp.eq.s32.totalorder %v2897_v3, %v2911_v8  ;;  %vm78_vm3 = vcmp.eq.s32.totalorder %v2900_v4, %v2911_v8  ;;  %vm77_vm4 = vcmp.eq.s32.totalorder %v2903_v5, %v2911_v8  ;;  %vm76_vm5 = vcmp.eq.s32.totalorder %v2906_v6, %v2911_v8  ;;  %v3241_v3 = vld [vmem:[%s3787_s1] ss:$0 sm:$0xff]  ;;  %s2853_s1 = smov [#allocation8]  }
  0x2d   :  { %2323 = vmatpush3.msk.msra.mxu0 %vm79_vm2, %v2851_v11  ;;  %v2088_v12 = vsel %vm78_vm3, 1.0, %v2849_v1  ;;  %v2087_v13 = vsel %vm77_vm4, 1.0, %v2849_v1  ;;  %v2086_v14 = vsel %vm76_vm5, 1.0, %v2849_v1  ;;  %vm75_vm6 = vcmp.eq.s32.totalorder %v2909_v7, %v2911_v8  ;;  %s2071_s6 = sshll.u32 %s2853_s1, 4  ;;  %s2072_s6 = int_to_ptr.vmem [resolvable:$true] %s2071_s6 }
  0x2e   :  { %2324 = vmatprep.subr.mxu0 %v2849_v1  ;;  %v2946_v15 = vsub.f32 %v2088_v12, %v2088_v12  ;;  %v2948_v16 = vsub.f32 %v2087_v13, %v2087_v13  ;;  %v2950_v17 = vsub.f32 %v2086_v14, %v2086_v14  ;;  %v2085_v18 = vsel %vm75_vm6, 1.0, %v2849_v1  ;;  %s2818_s7 = scalar_lea.vmem %s2072_s6, 16  ;;  %s2822_s8 = scalar_lea.vmem %s2072_s6, 32 }
  0x2f   :  { %2325 = vmatpush3.msk.msra.mxu0 %vm78_vm3, %v2851_v11  ;;  %v2960_v19 = vsub.f32 %v2085_v18, %v2085_v18  ;;  %v2089_v20 = vsel %vm79_vm2, 1.0, %v2849_v1  ;;  %vm74_vm7 = vcmp.eq.s32.totalorder %v2914_v9, %v2911_v8  ;;  %vm73_vm8 = vcmp.eq.s32.totalorder %v2917_v10, %v2911_v8  ;;  %p2819_p1 = scmp.ne.s32.totalorder %s2072_s6, %s2818_s7  ;;  %p2823_p2 = scmp.lt.s32.totalorder %s2072_s6, %s2072_s6 }
  0x30   :  { %2326 = vmatprep.subr.mxu0 %v2849_v1  ;;  %v2971_v22 = vsub.f32 %v2089_v20, %v2089_v20  ;;  %v2084_v23 = vsel %vm74_vm7, 1.0, %v2849_v1  ;;  %v288_v24 = vand.u32 4294901760, %v2946_v15  ;;  %v2083_v25 = vsel %vm73_vm8, 1.0, %v2849_v1  ;;  %p2824_p3 = scmp.lt.s32.totalorder %s2822_s8, %s2818_s7 }
  0x31   :  { %2327 = vmatpush3.msk.msra.mxu0 %vm77_vm4, %v2851_v11  ;;  %v2986_v26 = vsub.f32 %v2084_v23, %v2084_v23  ;;  %v295_v27 = vand.u32 4294901760, %v2948_v16  ;;  %v2082_v31 = vsel %vm72_vm9, 1.0, %v2849_v1  ;;  %v3005_v33 = vsub.f32 %v2083_v25, %v2083_v25 }
  0x32   :  { %2328 = vmatprep.subr.mxu0 %v2849_v1  ;;  %v281_v29 = vand.u32 4294901760, %v2971_v22  ;;  %v289_v30 = vsub.f32 %v2946_v15, %v288_v24  ;;  %v302_v35 = vand.u32 4294901760, %v2950_v17  ;;  %v309_v38 = vand.u32 4294901760, %v2960_v19  ;;  %p2825_p4 = por %p2824_p3, %p2823_p2 }
  0x33   :  { %2329 = vmatpush3.msk.msra.mxu0 %vm76_vm5, %v2851_v11  ;;  %v296_v37 = vsub.f32 %v2948_v16, %v295_v27  ;;  %v3023_v41 = vsub.f32 %v2082_v31, %v2082_v31  ;;  %v3026_v42 = vsub.f32 %v125_v32, %v3007_v34  ;;  %v316_v47 = vand.u32 4294901760, %v2986_v26 }
  0x34   :  { %2330 = vmatprep.subr.mxu0 %v2849_v1  ;;  %v282_v36 = vsub.f32 %v2971_v22, %v281_v29  ;;  %v290_v45 = vand.u32 4294901760, %v289_v30  ;;  %v303_v46 = vsub.f32 %v2950_v17, %v302_v35  ;;  %v310_v50 = vsub.f32 %v2960_v19, %v309_v38  ;;  %p2826_p5 = pnand %p2825_p4, %p2819_p1 }
  0x35   :  { %2331 = vmatpush3.msk.msra.mxu0 %vm75_vm6, %v2851_v11  ;;  %v214_v49 = vand.u32 4294901760, %v3026_v42  ;;  %v3044_v51 = vsub.f32 %v128_v39, %v3028_v43  ;;  %v297_v53 = vand.u32 4294901760, %v296_v37  ;;  %v323_v54 = vand.u32 4294901760, %v3005_v33 }
  0x36   :  { %2332 = vmatprep.subr.mxu0 %v2849_v1  ;;  %v283_v44 = vand.u32 4294901760, %v282_v36  ;;  %v317_v59 = vsub.f32 %v2986_v26, %v316_v47  ;;  %v304_v61 = vand.u32 4294901760, %v303_v46  ;;  %v3066_v62 = vsub.f32 %v131_v52, %v3049_v55 }
  0x37   :  { %2333 = vmatpush3.msk.msra.mxu0 %vm74_vm7, %v2851_v11  ;;  %v215_v57 = vsub.f32 %v3026_v42, %v214_v49  ;;  %v224_v58 = vand.u32 4294901760, %v3044_v51  ;;  %v330_v63 = vand.u32 4294901760, %v3023_v41  ;;  %v3069_v0 = vand.u32 4294901760, %v134_v60 }
  0x38   :  { %2354 = vmatpush3.msra.mxu1 %v283_v44  ;;  %2334 = vmatprep.subr.mxu0 %v2849_v1  ;;  %v311_v13 = vand.u32 4294901760, %v310_v50  ;;  %v137_v18 = vsel %vm123_vm1, %v122_v56, 0  ;;  %v324_v20 = vsub.f32 %v3005_v33, %v323_v54  ;;  %v234_v21 = vand.u32 4294901760, %v3066_v62  ;;  %v851_v56 = vld [vmem:[#allocation7 + $0x18] sm:$0xff] }
  0x39   :  { %2355 = vmatprep.subr.mxu1 %v2849_v1  ;;  %2335 = vmatpush3.msk.msra.mxu0 %vm73_vm8, %v2851_v11  ;;  %v216_v12 = vand.u32 4294901760, %v215_v57  ;;  %v225_v14 = vsub.f32 %v3044_v51, %v224_v58  ;;  %v3086_v23 = vsub.f32 %v134_v60, %v3069_v0  ;;  %v3088_v25 = vand.u32 4294901760, %v137_v18 }
  0x3a   :  { %2356 = vmatpush3.msra.mxu1 %v290_v45  ;;  %2336 = vmatprep.subr.mxu0 %v2849_v1  ;;  %v318_v30 = vand.u32 4294901760, %v317_v59  ;;  %v235_v31 = vsub.f32 %v3066_v62, %v234_v21  ;;  %v331_v32 = vsub.f32 %v3023_v41, %v330_v63  ;;  %v325_v39 = vand.u32 4294901760, %v324_v20 }
  0x3b   :  { %2357 = vmatprep.subr.mxu1 %v2849_v1  ;;  %2337 = vmatpush3.msk.msra.mxu0 %vm72_vm9, %v2851_v11  ;;  %v226_v28 = vand.u32 4294901760, %v225_v14  ;;  %v244_v36 = vand.u32 4294901760, %v3086_v23  ;;  %v3101_v37 = vsub.f32 %v137_v18, %v3088_v25  ;;  %vm105_vm11 = vcmp.eq.s32.totalorder %v2903_v5, %v3241_v3 }
  0x3c   :  { %2358 = vmatpush3.msra.mxu1 %v297_v53  ;;  %2384 = vmatprep.subr.mxu0 %v2849_v1  ;;  %v236_v40 = vand.u32 4294901760, %v235_v31  ;;  %v332_v45 = vand.u32 4294901760, %v331_v32  ;;  %vm104_vm12 = vcmp.eq.s32.totalorder %v2906_v6, %v3241_v3  ;;  %vm103_vm13 = vcmp.eq.s32.totalorder %v2909_v7, %v3241_v3 }
  0x3d   :  { %2359 = vmatprep.subr.mxu1 %v2849_v1  ;;  %2339 = vmatmul.mubr.f32.vlgmr.msra.gmra.mxu0 %v216_v12  ;;  %v245_v44 = vsub.f32 %v3086_v23, %v244_v36  ;;  %v254_v46 = vand.u32 4294901760, %v3101_v37  ;;  %vm102_vm14 = vcmp.eq.s32.totalorder %v2914_v9, %v3241_v3  ;;  %vm101_vm15 = vcmp.eq.s32.totalorder %v2917_v10, %v3241_v3 }
  0x3e   :  { %2360 = vmatpush3.msra.mxu1 %v304_v61  ;;  %2341 = vmatprep.mubr.msk.f32.mxu0 %vm2850_vm0, %v2849_v1  ;;  %vm100_vm1 = vcmp.eq.s32.totalorder %v2890_v2, %v3241_v3  ;;  %v2092_v53 = vsel %vm101_vm15, 1.0, %v2849_v1 }
  0x3f   :  { %2361 = vmatprep.subr.mxu1 %v2849_v1  ;;  %2385 = vmatpush3.msra.mxu0 %v2971_v22  ;;  %v246_v48 = vand.u32 4294901760, %v245_v44  ;;  %v255_v50 = vsub.f32 %v3101_v37, %v254_v46  ;;  %v2091_v8 = vsel %vm100_vm1, 1.0, %v2849_v1  ;;  %v3383_v60 = vsub.f32 %v2092_v53, %v2092_v53 }
  0x40   :  { %2362 = vmatpush3.msra.mxu1 %v311_v13  ;;  %2386 = vmatprep.subr.mxu0 %v2849_v1  ;;  %v852_v13 = vld [vmem:[#allocation7 + $0x20] sm:$0x3] }
  0x41   :  { %2363 = vmatprep.subr.mxu1 %v2849_v1  ;;  %2342 = vmatmul.mubr.f32.gmra.mxu0 %v226_v28  ;;  %v256_v52 = vand.u32 4294901760, %v255_v50  ;;  %v867_v31 = vsel %vm853_vm10, %v852_v13, 0 }
  0x42   :  { %2364 = vmatpush3.msra.mxu1 %v318_v30  ;;  %2344 = vmatprep.mubr.msk.f32.mxu0 %vm2850_vm0, %v2849_v1  ;;  %v1041_v30 = vand.u32 4294901760, %v3383_v60 }
  0x43   :  { %2365 = vmatprep.subr.mxu1 %v2849_v1  ;;  %2387 = vmatpush3.msra.mxu0 %v2946_v15  ;;  %v848_v15 = vld [vmem:[#allocation7] sm:$0xff] }
  0x44   :  { %2366 = vmatpush3.msra.mxu1 %v325_v39  ;;  %2388 = vmatprep.subr.mxu0 %v2849_v1  ;;  %v855_v4 = vsel %vm853_vm10, %v848_v15, 0 }
  0x45   :  { %2367 = vmatprep.subr.mxu1 %v2849_v1  ;;  %2345 = vmatmul.mubr.f32.gmra.mxu0 %v236_v40  ;;  %v3293_v22 = vand.u32 4294901760, %v855_v4 }
  0x46   :  { %2368 = vmatpush3.msra.mxu1 %v332_v45  ;;  %2389 = vmatpush3.msra.mxu0 %v2948_v16  ;;  %v2096_v16 = vsel %vm105_vm11, 1.0, %v2849_v1  ;;  %v3443_v45 = vand.u32 4294901760, %v867_v31 }
  0x47   :  { %2370 = vmatmul.mubr.f32.vlgmr.msra.gmra.mxu1 %v3007_v34  ;;  %2390 = vmatprep.subr.mxu0 %v2849_v1 }
  0x48   :  { %2347 = vmatprep.mubr.msk.f32.mxu0 %vm2850_vm0, %v2849_v1  ;;  %2391 = vmatpush3.msra.mxu0 %v2950_v17  ;;  %v849_v17 = vld [vmem:[#allocation7 + $0x8] sm:$0xff] }
  0x49   :  { %2348 = vmatmul.mubr.f32.gmra.mxu0 %v246_v48  ;;  %2372 = vmatprep.mubr.msk.f32.mxu1 %vm2850_vm0, %v2849_v1  ;;  %v1042_v48 = vsub.f32 %v3383_v60, %v1041_v30 }
  0x4a   :  { %2392 = vmatprep.subr.mxu0 %v2849_v1  ;;  %2415 = vmatprep.subr.mxu1 %v2849_v1 }
  0x4b   :  { %2373 = vmatmul.mubr.f32.gmra.mxu1 %v3028_v43  ;;  %2393 = vmatpush3.msra.mxu0 %v2960_v19  ;;  %v2095_v19 = vsel %vm104_vm12, 1.0, %v2849_v1 }
  0x4c   :  { %2394 = vmatprep.subr.mxu0 %v2849_v1  ;;  %2416 = vmatpush3.msk.msra.mxu1 %vm79_vm2, %v2851_v11 }
  0x4d   :  { %2350 = vmatprep.mubr.msk.f32.mxu0 %vm2850_vm0, %v2849_v1  ;;  %2395 = vmatpush3.msra.mxu0 %v2986_v26  ;;  %v858_v26 = vsel %vm853_vm10, %v849_v17, 0  ;;  %v3467_v17 = vsub.f32 %v867_v31, %v3443_v45 }
  0x4e   :  { %2417 = vmatprep.subr.mxu1 %v2849_v1  ;;  %2351 = vmatmul.mubr.f32.gmra.mxu0 %v256_v52 }
  0x4f   :  { %2375 = vmatprep.mubr.msk.f32.mxu1 %vm2850_vm0, %v2849_v1  ;;  %2396 = vmatprep.subr.mxu0 %v2849_v1 }
  0x50   :  { %2418 = vmatpush3.msk.msra.mxu1 %vm78_vm3, %v2851_v11  ;;  %2397 = vmatpush3.msra.mxu0 %v3005_v33  ;;  %v2094_v33 = vsel %vm103_vm13, 1.0, %v2849_v1 }
  0x51   :  { %2376 = vmatmul.mubr.f32.gmra.mxu1 %v3049_v55  ;;  %2419 = vmatprep.subr.mxu1 %v2849_v1 }
  0x52   :  { %2398 = vmatprep.subr.mxu0 %v2849_v1  ;;  %2420 = vmatpush3.msk.msra.mxu1 %vm77_vm4, %v2851_v11 }
  0x53   :  { %2399 = vmatpush3.msra.mxu0 %v3023_v41  ;;  %2400 = vmatprep.mubr.msk.f32.mxu0 %vm2850_vm0, %v2849_v1  ;;  %v3332_v41 = vand.u32 4294901760, %v858_v26 }
  0x54   :  { %2421 = vmatprep.subr.mxu1 %v2849_v1  ;;  %2378 = vmatprep.mubr.msk.f32.mxu1 %vm2850_vm0, %v2849_v1 }
  0x55   :  { %2401 = vmatmul.mubr.f32.vlgmr.msra.gmra.mxu0 %v3026_v42  ;;  %2422 = vmatpush3.msk.msra.mxu1 %vm76_vm5, %v2851_v11  ;;  %v3369_v57 = vsub.f32 %v858_v26, %v3332_v41 }
  0x56   :  { %2379 = vmatmul.mubr.f32.gmra.mxu1 %v3069_v0  ;;  %2423 = vmatprep.subr.mxu1 %v2849_v1 }
  0x57   :  { %2424 = vmatpush3.msk.msra.mxu1 %vm75_vm6, %v2851_v11  ;;  %2403 = vmatprep.mubr.msk.f32.mxu0 %vm2850_vm0, %v2849_v1  ;;  %v952_v18 = vand.u32 4294901760, %v3369_v57 }
  0x58   :  { %2425 = vmatprep.subr.mxu1 %v2849_v1  ;;  %2381 = vmatprep.mubr.msk.f32.mxu1 %vm2850_vm0, %v2849_v1 }
  0x59   :  { %2404 = vmatmul.mubr.f32.gmra.mxu0 %v3044_v51  ;;  %2426 = vmatpush3.msk.msra.mxu1 %vm74_vm7, %v2851_v11  ;;  %v953_v39 = vsub.f32 %v3369_v57, %v952_v18 }
  0x5a   :  { %2446 = vmatprep.subr.mxu0 %v2849_v1  ;;  %2382 = vmatmul.mubr.f32.gmra.mxu1 %v3088_v25 }
  0x5b   :  { %2427 = vmatprep.subr.mxu1 %v2849_v1  ;;  %2447 = vmatpush3.msra.mxu0 %v281_v29  ;;  %v3311_v29 = vsub.f32 %v2095_v19, %v2095_v19  ;;  %v954_v50 = vand.u32 4294901760, %v953_v39  ;;  %v1043_v19 = vand.u32 4294901760, %v1042_v48 }
  0x5c   :  { %2428 = vmatpush3.msk.msra.mxu1 %vm73_vm8, %v2851_v11  ;;  %2448 = vmatprep.subr.mxu0 %v2849_v1 }
  0x5d   :  { %2406 = vmatprep.mubr.msk.f32.mxu0 %vm2850_vm0, %v2849_v1  ;;  %2429 = vmatprep.subr.mxu1 %v2849_v1 }
  0x5e   :  { %2449 = vmatpush3.msra.mxu0 %v288_v24  ;;  %2430 = vmatpush3.msk.msra.mxu1 %vm72_vm9, %v2851_v11  ;;  %v3298_v24 = vsub.f32 %v2096_v16, %v2096_v16 }
  0x5f   :  { %2407 = vmatmul.mubr.f32.gmra.mxu0 %v3066_v62  ;;  %2431 = vmatprep.mubr.msk.f32.mxu1 %vm2850_vm0, %v2849_v1  ;;  %v864_v62 = vsel %vm853_vm10, %v851_v56, 0 }
  0x60   :  { %2450 = vmatprep.subr.mxu0 %v2849_v1  ;;  %2432 = vmatmul.mubr.f32.vlgmr.msra.gmra.mxu1 %v214_v49  ;;  %v1013_v42 = vand.u32 4294901760, %v3298_v24  ;;  %v3346_v49 = vsub.f32 %v2094_v33, %v2094_v33  ;;  %v982_v33 = vand.u32 4294901760, %v3467_v17 }
  0x61   :  { %2451 = vmatpush3.msra.mxu0 %v295_v27  ;;  %2409 = vmatprep.mubr.msk.f32.mxu0 %vm2850_vm0, %v2849_v1  ;;  %v850_v27 = vld [vmem:[#allocation7 + $0x10] sm:$0xff] }
  0x62   :  { %2452 = vmatprep.subr.mxu0 %v2849_v1  ;;  %2434 = vmatprep.mubr.msk.f32.mxu1 %vm2850_vm0, %v2849_v1  ;;  %v1014_v59 = vsub.f32 %v3298_v24, %v1013_v42  ;;  %v1027_v61 = vand.u32 4294901760, %v3346_v49 }
  0x63   :  { %2453 = vmatpush3.msra.mxu0 %v302_v35  ;;  %2477 = vmatprep.subr.mxu1 %v2849_v1  ;;  %v2093_v35 = vsel %vm102_vm14, 1.0, %v2849_v1 }
  0x64   :  { %2410 = vmatmul.mubr.f32.gmra.mxu0 %v3086_v23  ;;  %2454 = vmatprep.subr.mxu0 %v2849_v1  ;;  %v3350_v51 = vsub.f32 %v2093_v35, %v2093_v35  ;;  %v3411_v23 = vand.u32 4294901760, %v864_v62  ;;  %v1028_v28 = vsub.f32 %v3346_v49, %v1027_v61  ;;  %v983_v35 = vsub.f32 %v3467_v17, %v982_v33 }
  0x65   :  { %2435 = vmatmul.mubr.f32.gmra.mxu1 %v224_v58  ;;  %2455 = vmatpush3.msra.mxu0 %v309_v38  ;;  %v3330_v38 = vsub.f32 %v855_v4, %v3293_v22 }
  0x66   :  { %2456 = vmatprep.subr.mxu0 %v2849_v1  ;;  %2478 = vmatpush3.msk.msra.mxu1 %vm79_vm2, %v2851_v11  ;;  %v1034_v20 = vand.u32 4294901760, %v3350_v51  ;;  %vm1557_vm2 = vcmask 277504  }
  0x67   :  { %2412 = vmatprep.mubr.msk.f32.mxu0 %vm2850_vm0, %v2849_v1  ;;  %2457 = vmatpush3.msra.mxu0 %v316_v47  ;;  %v861_v47 = vsel %vm853_vm10, %v850_v27, 0 }
  0x68   :  { %2479 = vmatprep.subr.mxu1 %v2849_v1  ;;  %2413 = vmatmul.mubr.f32.gmra.mxu0 %v3101_v37  ;;  %v3371_v58 = vand.u32 4294901760, %v861_v47  ;;  %v1035_v40 = vsub.f32 %v3350_v51, %v1034_v20 }
  0x69   :  { %2437 = vmatprep.mubr.msk.f32.mxu1 %vm2850_vm0, %v2849_v1  ;;  %2458 = vmatprep.subr.mxu0 %v2849_v1 }
  0x6a   :  { %2480 = vmatpush3.msk.msra.mxu1 %vm78_vm3, %v2851_v11  ;;  %2459 = vmatpush3.msra.mxu0 %v323_v54  ;;  %v1020_v54 = vand.u32 4294901760, %v3311_v29  ;;  %v1036_v52 = vand.u32 4294901760, %v1035_v40  ;;  %vm1561_vm3 = vcmask 1041408  }
  0x6b   :  { %2438 = vmatmul.mubr.f32.gmra.mxu1 %v234_v21  ;;  %2481 = vmatprep.subr.mxu1 %v2849_v1  ;;  %v3406_v21 = vsub.f32 %v861_v47, %v3371_v58  ;;  %v984_v47 = vand.u32 4294901760, %v983_v35 }
  0x6c   :  { %2460 = vmatprep.subr.mxu0 %v2849_v1  ;;  %2482 = vmatpush3.msk.msra.mxu1 %vm77_vm4, %v2851_v11  ;;  %v1021_v12 = vsub.f32 %v3311_v29, %v1020_v54 }
  0x6d   :  { %2461 = vmatpush3.msra.mxu0 %v330_v63  ;;  %2462 = vmatprep.mubr.msk.f32.mxu0 %vm2850_vm0, %v2849_v1  ;;  %v3390_v63 = vsub.f32 %v2091_v8, %v2091_v8  ;;  %v962_v44 = vand.u32 4294901760, %v3406_v21 }
  0x6e   :  { %2483 = vmatprep.subr.mxu1 %v2849_v1  ;;  %2440 = vmatprep.mubr.msk.f32.mxu1 %vm2850_vm0, %v2849_v1  ;;  %v1022_v32 = vand.u32 4294901760, %v1021_v12 }
  0x6f   :  { %2463 = vmatmul.mubr.f32.vlgmr.msra.gmra.mxu0 %v3007_v34  ;;  %2484 = vmatpush3.msk.msra.mxu1 %vm76_vm5, %v2851_v11  ;;  %v963_v15 = vsub.f32 %v3406_v21, %v962_v44 }
  0x70   :  { %2441 = vmatmul.mubr.f32.gmra.mxu1 %v244_v36  ;;  %2485 = vmatprep.subr.mxu1 %v2849_v1  ;;  %v1048_v36 = vand.u32 4294901760, %v3390_v63 }
  0x71   :  { %2486 = vmatpush3.msk.msra.mxu1 %vm75_vm6, %v2851_v11  ;;  %2465 = vmatprep.mubr.msk.f32.mxu0 %vm2850_vm0, %v2849_v1 }
  0x72   :  { %2487 = vmatprep.subr.mxu1 %v2849_v1  ;;  %2443 = vmatprep.mubr.msk.f32.mxu1 %vm2850_vm0, %v2849_v1  ;;  %v1049_v4 = vsub.f32 %v3390_v63, %v1048_v36 }
  0x73   :  { %2466 = vmatmul.mubr.f32.gmra.mxu0 %v3028_v43  ;;  %2488 = vmatpush3.msk.msra.mxu1 %vm74_vm7, %v2851_v11 }
  0x74   :  { %2444 = vmatmul.mubr.f32.gmra.mxu1 %v254_v46  ;;  %2489 = vmatprep.subr.mxu1 %v2849_v1  ;;  %v1029_v46 = vand.u32 4294901760, %v1028_v28  ;;  %v1050_v26 = vand.u32 4294901760, %v1049_v4 }
  0x75   :  { %2490 = vmatpush3.msk.msra.mxu1 %vm73_vm8, %v2851_v11  ;;  %2468 = vmatprep.mubr.msk.f32.mxu0 %vm2850_vm0, %v2849_v1 }
  0x76   :  { %2491 = vmatprep.subr.mxu1 %v2849_v1  ;;  %2493 = vmatprep.mubr.msk.f32.mxu1 %vm2850_vm0, %v2849_v1 }
  0x77   :  { %2469 = vmatmul.mubr.f32.gmra.mxu0 %v3049_v55  ;;  %2492 = vmatpush3.msk.msra.mxu1 %vm72_vm9, %v2851_v11 }
  0x78   :  { %2508 = vmatprep.subr.mxu0 %v2849_v1  ;;  %2494 = vmatmul.mubr.f32.vlgmr.msra.gmra.mxu1 %v3007_v34  ;;  %v942_v34 = vand.u32 4294901760, %v3330_v38 }
  0x79   :  { %2509 = vmatpush3.msk.msra.mxu0 %vm105_vm11, %v2851_v11  ;;  %2471 = vmatprep.mubr.msk.f32.mxu0 %vm2850_vm0, %v2849_v1 }
  0x7a   :  { %2510 = vmatprep.subr.mxu0 %v2849_v1  ;;  %2496 = vmatprep.mubr.msk.f32.mxu1 %vm2850_vm0, %v2849_v1  ;;  %v943_v14 = vsub.f32 %v3330_v38, %v942_v34 }
  0x7b   :  { %2511 = vmatpush3.msk.msra.mxu0 %vm104_vm12, %v2851_v11  ;;  %2535 = vmatprep.subr.mxu1 %v2849_v1 }
  0x7c   :  { %2472 = vmatmul.mubr.f32.gmra.mxu0 %v3069_v0  ;;  %2512 = vmatprep.subr.mxu0 %v2849_v1  ;;  %v944_v37 = vand.u32 4294901760, %v943_v14 }
  0x7d   :  { %2497 = vmatmul.mubr.f32.gmra.mxu1 %v3028_v43  ;;  %2513 = vmatpush3.msk.msra.mxu0 %vm103_vm13, %v2851_v11  ;;  %v1015_v43 = vand.u32 4294901760, %v1014_v59 }
  0x7e   :  { %2514 = vmatprep.subr.mxu0 %v2849_v1  ;;  %2474 = vmatprep.mubr.msk.f32.mxu0 %vm2850_vm0, %v2849_v1 }
  0x7f   :  { %2515 = vmatpush3.msk.msra.mxu0 %vm102_vm14, %v2851_v11  ;;  %2499 = vmatprep.mubr.msk.f32.mxu1 %vm2850_vm0, %v2849_v1 }
  0x80   :  { %2475 = vmatmul.mubr.f32.gmra.mxu0 %v3088_v25  ;;  %2516 = vmatprep.subr.mxu0 %v2849_v1 }
  0x81   :  { %2500 = vmatmul.mubr.f32.gmra.mxu1 %v3049_v55  ;;  %2517 = vmatpush3.msk.msra.mxu0 %vm101_vm15, %v2851_v11  ;;  %v3441_v55 = vsub.f32 %v864_v62, %v3411_v23 }
  0x82   :  { %2518 = vmatprep.subr.mxu0 %v2849_v1  ;;  %2536 = vmatpush3.msra.mxu1 %v1015_v43 }
  0x83   :  { %2519 = vmatpush3.msk.msra.mxu0 %vm100_vm1, %v2851_v11  ;;  %2520 = vmatprep.mubr.msk.f32.mxu0 %vm2850_vm0, %v2849_v1  ;;  %v972_v16 = vand.u32 4294901760, %v3441_v55 }
  0x84   :  { %2537 = vmatprep.subr.mxu1 %v2849_v1  ;;  %2502 = vmatprep.mubr.msk.f32.mxu1 %vm2850_vm0, %v2849_v1 }
  0x85   :  { %2521 = vmatmul.mubr.f32.vlgmr.msra.gmra.mxu0 %v944_v37  ;;  %2538 = vmatpush3.msra.mxu1 %v1022_v32  ;;  %v973_v27 = vsub.f32 %v3441_v55, %v972_v16 }
  0x86   :  { %2503 = vmatmul.mubr.f32.gmra.mxu1 %v3069_v0  ;;  %2539 = vmatprep.subr.mxu1 %v2849_v1  ;;  %v964_v0 = vand.u32 4294901760, %v963_v15 }
  0x87   :  { %2540 = vmatpush3.msra.mxu1 %v1029_v46  ;;  %2523 = vmatprep.mubr.msk.f32.mxu0 %vm2850_vm0, %v2849_v1 }
  0x88   :  { %2541 = vmatprep.subr.mxu1 %v2849_v1  ;;  %2505 = vmatprep.mubr.msk.f32.mxu1 %vm2850_vm0, %v2849_v1 }
  0x89   :  { %2524 = vmatmul.mubr.f32.gmra.mxu0 %v954_v50  ;;  %2542 = vmatpush3.msra.mxu1 %v1036_v52 }
  0x8a   :  { %2506 = vmatmul.mubr.f32.gmra.mxu1 %v3088_v25  ;;  %2543 = vmatprep.subr.mxu1 %v2849_v1  ;;  %v974_v25 = vand.u32 4294901760, %v973_v27 }
  0x8b   :  { %2544 = vmatpush3.msra.mxu1 %v1043_v19  ;;  %2526 = vmatprep.mubr.msk.f32.mxu0 %vm2850_vm0, %v2849_v1 }
  0x8c   :  { %2545 = vmatprep.subr.mxu1 %v2849_v1  ;;  %2547 = vmatprep.mubr.msk.f32.mxu1 %vm2850_vm0, %v2849_v1 }
  0x8d   :  { %2527 = vmatmul.mubr.f32.gmra.mxu0 %v964_v0  ;;  %2546 = vmatpush3.msra.mxu1 %v1050_v26 }
  0x8e   :  { %2562 = vmatprep.subr.mxu0 %v2849_v1  ;;  %2548 = vmatmul.mubr.f32.vlgmr.msra.gmra.mxu1 %v3293_v22 }
  0x8f   :  { %2563 = vmatpush3.msra.mxu0 %v3298_v24  ;;  %2529 = vmatprep.mubr.msk.f32.mxu0 %vm2850_vm0, %v2849_v1 }
  0x90   :  { %2564 = vmatprep.subr.mxu0 %v2849_v1  ;;  %2550 = vmatprep.mubr.msk.f32.mxu1 %vm2850_vm0, %v2849_v1 }
  0x91   :  { %2565 = vmatpush3.msra.mxu0 %v3311_v29  ;;  %2589 = vmatprep.subr.mxu1 %v2849_v1 }
  0x92   :  { %2530 = vmatmul.mubr.f32.gmra.mxu0 %v974_v25  ;;  %2566 = vmatprep.subr.mxu0 %v2849_v1 }
  0x93   :  { %2551 = vmatmul.mubr.f32.gmra.mxu1 %v3332_v41  ;;  %2567 = vmatpush3.msra.mxu0 %v3346_v49 }
  0x94   :  { %2568 = vmatprep.subr.mxu0 %v2849_v1  ;;  %2532 = vmatprep.mubr.msk.f32.mxu0 %vm2850_vm0, %v2849_v1 }
  0x95   :  { %2569 = vmatpush3.msra.mxu0 %v3350_v51  ;;  %2553 = vmatprep.mubr.msk.f32.mxu1 %vm2850_vm0, %v2849_v1 }
  0x96   :  { %2533 = vmatmul.mubr.f32.gmra.mxu0 %v984_v47  ;;  %2570 = vmatprep.subr.mxu0 %v2849_v1 }
  0x97   :  { %2554 = vmatmul.mubr.f32.gmra.mxu1 %v3371_v58  ;;  %2571 = vmatpush3.msra.mxu0 %v3383_v60 }
  0x98   :  { %2572 = vmatprep.subr.mxu0 %v2849_v1  ;;  %2590 = vmatpush3.msk.msra.mxu1 %vm105_vm11, %v2851_v11 }
  0x99   :  { %2573 = vmatpush3.msra.mxu0 %v3390_v63  ;;  %2574 = vmatprep.mubr.msk.f32.mxu0 %vm2850_vm0, %v2849_v1 }
  0x9a   :  { %2591 = vmatprep.subr.mxu1 %v2849_v1  ;;  %2556 = vmatprep.mubr.msk.f32.mxu1 %vm2850_vm0, %v2849_v1 }
  0x9b   :  { %2575 = vmatmul.mubr.f32.vlgmr.msra.gmra.mxu0 %v3330_v38  ;;  %2592 = vmatpush3.msk.msra.mxu1 %vm104_vm12, %v2851_v11 }
  0x9c   :  { %2557 = vmatmul.mubr.f32.gmra.mxu1 %v3411_v23  ;;  %2593 = vmatprep.subr.mxu1 %v2849_v1 }
  0x9d   :  { %2594 = vmatpush3.msk.msra.mxu1 %vm103_vm13, %v2851_v11  ;;  %2577 = vmatprep.mubr.msk.f32.mxu0 %vm2850_vm0, %v2849_v1 }
  0x9e   :  { %2595 = vmatprep.subr.mxu1 %v2849_v1  ;;  %2559 = vmatprep.mubr.msk.f32.mxu1 %vm2850_vm0, %v2849_v1 }
  0x9f   :  { %2578 = vmatmul.mubr.f32.gmra.mxu0 %v3369_v57  ;;  %2596 = vmatpush3.msk.msra.mxu1 %vm102_vm14, %v2851_v11 }
  0xa0   :  { %2560 = vmatmul.mubr.f32.gmra.mxu1 %v3443_v45  ;;  %2597 = vmatprep.subr.mxu1 %v2849_v1 }
  0xa1   :  { %2598 = vmatpush3.msk.msra.mxu1 %vm101_vm15, %v2851_v11  ;;  %2580 = vmatprep.mubr.msk.f32.mxu0 %vm2850_vm0, %v2849_v1 }
  0xa2   :  { %2599 = vmatprep.subr.mxu1 %v2849_v1  ;;  %2601 = vmatprep.mubr.msk.f32.mxu1 %vm2850_vm0, %v2849_v1 }
  0xa3   :  { %2581 = vmatmul.mubr.f32.gmra.mxu0 %v3406_v21  ;;  %2600 = vmatpush3.msk.msra.mxu1 %vm100_vm1, %v2851_v11 }
  0xa4   :  { %2616 = vmatprep.subr.mxu0 %v2849_v1  ;;  %2602 = vmatmul.mubr.f32.vlgmr.msra.gmra.mxu1 %v942_v34 }
  0xa5   :  { %2617 = vmatpush3.msra.mxu0 %v1013_v42  ;;  %2583 = vmatprep.mubr.msk.f32.mxu0 %vm2850_vm0, %v2849_v1 }
  0xa6   :  { %2618 = vmatprep.subr.mxu0 %v2849_v1  ;;  %2604 = vmatprep.mubr.msk.f32.mxu1 %vm2850_vm0, %v2849_v1 }
  0xa7   :  { %2619 = vmatpush3.msra.mxu0 %v1020_v54  ;;  %2643 = vmatprep.subr.mxu1 %v2849_v1 }
  0xa8   :  { %2584 = vmatmul.mubr.f32.gmra.mxu0 %v3441_v55  ;;  %2620 = vmatprep.subr.mxu0 %v2849_v1 }
  0xa9   :  { %2605 = vmatmul.mubr.f32.gmra.mxu1 %v952_v18  ;;  %2621 = vmatpush3.msra.mxu0 %v1027_v61 }
  0xaa   :  { %2622 = vmatprep.subr.mxu0 %v2849_v1  ;;  %2586 = vmatprep.mubr.msk.f32.mxu0 %vm2850_vm0, %v2849_v1 }
  0xab   :  { %2623 = vmatpush3.msra.mxu0 %v1034_v20  ;;  %2607 = vmatprep.mubr.msk.f32.mxu1 %vm2850_vm0, %v2849_v1 }
  0xac   :  { %2587 = vmatmul.mubr.f32.gmra.mxu0 %v3467_v17  ;;  %2624 = vmatprep.subr.mxu0 %v2849_v1 }
  0xad   :  { %2608 = vmatmul.mubr.f32.gmra.mxu1 %v962_v44  ;;  %2625 = vmatpush3.msra.mxu0 %v1041_v30 }
  0xae   :  { %2626 = vmatprep.subr.mxu0 %v2849_v1  ;;  %2644 = vmatpush3.msk.msra.mxu1 %vm105_vm11, %v2851_v11 }
  0xaf   :  { %2627 = vmatpush3.msra.mxu0 %v1048_v36  ;;  %2628 = vmatprep.mubr.msk.f32.mxu0 %vm2850_vm0, %v2849_v1 }
  0xb0   :  { %2645 = vmatprep.subr.mxu1 %v2849_v1  ;;  %2610 = vmatprep.mubr.msk.f32.mxu1 %vm2850_vm0, %v2849_v1 }
  0xb1   :  { %2629 = vmatmul.mubr.f32.vlgmr.msra.gmra.mxu0 %v3293_v22  ;;  %2646 = vmatpush3.msk.msra.mxu1 %vm104_vm12, %v2851_v11 }
  0xb2   :  { %2611 = vmatmul.mubr.f32.gmra.mxu1 %v972_v16  ;;  %2647 = vmatprep.subr.mxu1 %v2849_v1 }
  0xb3   :  { %2648 = vmatpush3.msk.msra.mxu1 %vm103_vm13, %v2851_v11  ;;  %2631 = vmatprep.mubr.msk.f32.mxu0 %vm2850_vm0, %v2849_v1 }
  0xb4   :  { %2649 = vmatprep.subr.mxu1 %v2849_v1  ;;  %2613 = vmatprep.mubr.msk.f32.mxu1 %vm2850_vm0, %v2849_v1 }
  0xb5   :  { %2632 = vmatmul.mubr.f32.gmra.mxu0 %v3332_v41  ;;  %2650 = vmatpush3.msk.msra.mxu1 %vm102_vm14, %v2851_v11 }
  0xb6   :  { %2614 = vmatmul.mubr.f32.gmra.mxu1 %v982_v33  ;;  %2651 = vmatprep.subr.mxu1 %v2849_v1 }
  0xb7   :  { %2652 = vmatpush3.msk.msra.mxu1 %vm101_vm15, %v2851_v11  ;;  %2634 = vmatprep.mubr.msk.f32.mxu0 %vm2850_vm0, %v2849_v1 }
  0xb8   :  { %2653 = vmatprep.subr.mxu1 %v2849_v1  ;;  %2655 = vmatprep.mubr.msk.f32.mxu1 %vm2850_vm0, %v2849_v1 }
  0xb9   :  { %2635 = vmatmul.mubr.f32.gmra.mxu0 %v3371_v58  ;;  %2654 = vmatpush3.msk.msra.mxu1 %vm100_vm1, %v2851_v11 }
  0xba   :  { %2656 = vmatmul.mubr.f32.vlgmr.msra.gmra.mxu1 %v3293_v22  ;;  %2637 = vmatprep.mubr.msk.f32.mxu0 %vm2850_vm0, %v2849_v1 }
  0xbb   :  { %2658 = vmatprep.mubr.msk.f32.mxu1 %vm2850_vm0, %v2849_v1  ;;  %2670 = vmatprep.subr.mxu0 %v2849_v1 }
  0xbc   :  { %2683 = vmatprep.subr.mxu1 %v2849_v1 }
  0xbd   :  { %2638 = vmatmul.mubr.f32.gmra.mxu0 %v3411_v23 }
  0xbe   :  { %2659 = vmatmul.mubr.f32.gmra.mxu1 %v3332_v41  ;;  %2640 = vmatprep.mubr.msk.f32.mxu0 %vm2850_vm0, %v2849_v1 }
  0xbf   :  { %2661 = vmatprep.mubr.msk.f32.mxu1 %vm2850_vm0, %v2849_v1 }
  0xc1   :  { %2641 = vmatmul.mubr.f32.gmra.mxu0 %v3443_v45 }
  0xc2   :  { %2662 = vmatmul.mubr.f32.gmra.mxu1 %v3371_v58  ;;  %2680 = vmatprep.mubr.msk.f32.mxu0 %vm2850_vm0, %v2849_v1 }
  0xc3   :  { %2664 = vmatprep.mubr.msk.f32.mxu1 %vm2850_vm0, %v2849_v1 }
  0xc6   :  { %2665 = vmatmul.mubr.f32.gmra.mxu1 %v3411_v23 }
  0xc7   :  { %2667 = vmatprep.mubr.msk.f32.mxu1 %vm2850_vm0, %v2849_v1 }
  0xca   :  { %2668 = vmatmul.mubr.f32.gmra.mxu1 %v3443_v45 }
  0xcb   :  { %2693 = vmatprep.mubr.msk.f32.mxu1 %vm2850_vm0, %v2849_v1 }
  0xfd   :  { %v218_v2 = vpop.f32.mrf.mxu0 }
  0xff   :  { %v2340_v5 = vpop.f32.mrf.mxu0 }
 0x101   :  { %v228_v6 = vpop.f32.mrf.mxu0 }
 0x103   :  { %v2343_v7 = vpop.f32.mrf.mxu0 }
 0x105   :  { %v238_v9 = vpop.f32.mrf.mxu0 }
 0x107   :  { %v369_v10 = vpop.f32.mrf.mxu1  ;;  %v2346_v3 = vpop.f32.mrf.mxu0 }
 0x108   :  { %v370_v22 = vadd.f32 %v369_v10, %v218_v2 }
 0x109   :  { %v2371_v24 = vpop.f32.mrf.mxu1  ;;  %v248_v29 = vpop.f32.mrf.mxu0 }
 0x10b   :  { %v375_v38 = vpop.f32.mrf.mxu1  ;;  %v2349_v41 = vpop.f32.mrf.mxu0 }
 0x10c   :  { %v376_v42 = vadd.f32 %v375_v38, %v228_v6 }
 0x10d   :  { %v2374_v49 = vpop.f32.mrf.mxu1 }
 0x10e   :  { %v258_v51 = vpop.f32.mrf.mxu0 }
 0x110   :  { %v2352_v53 = vpop.f32.mrf.mxu0 }
 0x111   :  { %v381_v54 = vpop.f32.mrf.mxu1 }
 0x112   :  { %v382_v56 = vadd.f32 %v381_v54, %v238_v9 }
 0x113   :  { %v2377_v8 = vpop.f32.mrf.mxu1 }
 0x115   :  { %v481_v34 = vpop.f32.mrf.mxu0 }
 0x116   :  { %v482_v57 = vadd.f32 %v481_v34, %v370_v22  ;;  %v387_v58 = vpop.f32.mrf.mxu1 }
 0x117   :  { %v388_v59 = vadd.f32 %v387_v58, %v248_v29  ;;  %v2402_v60 = vpop.f32.mrf.mxu0 }
 0x118   :  { %v2380_v61 = vpop.f32.mrf.mxu1 }
 0x119   :  { %v488_v62 = vpop.f32.mrf.mxu0 }
 0x11a   :  { %v489_v63 = vadd.f32 %v488_v62, %v376_v42  ;;  %v393_v12 = vpop.f32.mrf.mxu1 }
 0x11b   :  { %v394_v13 = vadd.f32 %v393_v12, %v258_v51  ;;  %v2405_v14 = vpop.f32.mrf.mxu0 }
 0x11c   :  { %v2383_v18 = vpop.f32.mrf.mxu1 }
 0x11f   :  { %v495_v20 = vpop.f32.mrf.mxu0 }
 0x120   :  { %v496_v21 = vadd.f32 %v495_v20, %v382_v56  ;;  %v590_v43 = vpop.f32.mrf.mxu1 }
 0x121   :  { %v591_v23 = vadd.f32 %v590_v43, %v482_v57  ;;  %v2408_v28 = vpop.f32.mrf.mxu0 }
 0x122   :  { %v2433_v30 = vpop.f32.mrf.mxu1 }
 0x124   :  { %v502_v31 = vpop.f32.mrf.mxu0 }
 0x125   :  { %v503_v32 = vadd.f32 %v502_v31, %v388_v59  ;;  %v598_v36 = vpop.f32.mrf.mxu1 }
 0x126   :  { %v599_v37 = vadd.f32 %v598_v36, %v489_v63  ;;  %v2411_v39 = vpop.f32.mrf.mxu0 }
 0x127   :  { %v2436_v40 = vpop.f32.mrf.mxu1 }
 0x128   :  { %v509_v44 = vpop.f32.mrf.mxu0 }
 0x129   :  { %v510_v55 = vadd.f32 %v509_v44, %v394_v13 }
 0x12a   :  { %v2414_v45 = vpop.f32.mrf.mxu0 }
 0x12b   :  { %v606_v46 = vpop.f32.mrf.mxu1 }
 0x12c   :  { %v607_v48 = vadd.f32 %v606_v46, %v496_v21 }
 0x12d   :  { %v2439_v50 = vpop.f32.mrf.mxu1 }
 0x12f   :  { %v717_v52 = vpop.f32.mrf.mxu0 }
 0x130   :  { %v718_v15 = vadd.f32 %v717_v52, %v591_v23  ;;  %v614_v4 = vpop.f32.mrf.mxu1 }
 0x131   :  { %v615_v16 = vadd.f32 %v614_v4, %v503_v32  ;;  %v2464_v17 = vpop.f32.mrf.mxu0 }
 0x132   :  { %v2442_v19 = vpop.f32.mrf.mxu1 }
 0x133   :  { %v723_v0 = vpop.f32.mrf.mxu0 }
 0x134   :  { %v724_v26 = vadd.f32 %v723_v0, %v599_v37  ;;  %v622_v27 = vpop.f32.mrf.mxu1 }
 0x135   :  { %v623_v33 = vadd.f32 %v622_v27, %v510_v55  ;;  %v2467_v25 = vpop.f32.mrf.mxu0 }
 0x136   :  { %v2445_v35 = vpop.f32.mrf.mxu1 }
 0x137   :  { %v729_v47 = vpop.f32.mrf.mxu0 }
 0x138   :  { %v730_v2 = vadd.f32 %v729_v47, %v607_v48  ;;  %v820_v5 = vpop.f32.mrf.mxu1 }
 0x139   :  { %v3666_v6 = vadd.f32 %v820_v5, %v718_v15  ;;  %v2470_v7 = vpop.f32.mrf.mxu0 }
 0x13a   :  { %v2495_v9 = vpop.f32.mrf.mxu1 }
 0x13c   :  { %v735_v10 = vpop.f32.mrf.mxu0 }
 0x13d   :  { %v736_v3 = vadd.f32 %v735_v10, %v615_v16  ;;  %v826_v22 = vpop.f32.mrf.mxu1 }
 0x13e   :  { %v3668_v24 = vadd.f32 %v826_v22, %v724_v26  ;;  %v2473_v29 = vpop.f32.mrf.mxu0 }
 0x13f   :  { %v2498_v38 = vpop.f32.mrf.mxu1 }
 0x140   :  { %v741_v41 = vpop.f32.mrf.mxu0 }
 0x141   :  { %v742_v42 = vadd.f32 %v741_v41, %v623_v33  ;;  %v832_v49 = vpop.f32.mrf.mxu1 }
 0x142   :  { %v3670_v51 = vadd.f32 %v832_v49, %v730_v2  ;;  %v2476_v53 = vpop.f32.mrf.mxu0 }
 0x143   :  { %v2501_v54 = vpop.f32.mrf.mxu1 }
 0x145   :  { %v946_v56 = vpop.f32.mrf.mxu0 }
 0x146   :  { %v838_v8 = vpop.f32.mrf.mxu1 }
 0x147   :  { %v3672_v34 = vadd.f32 %v838_v8, %v736_v3  ;;  %v2522_v57 = vpop.f32.mrf.mxu0 }
 0x148   :  { %v2504_v58 = vpop.f32.mrf.mxu1 }
 0x149   :  { %v956_v59 = vpop.f32.mrf.mxu0 }
 0x14a   :  { %v844_v60 = vpop.f32.mrf.mxu1 }
 0x14b   :  { %v3674_v61 = vadd.f32 %v844_v60, %v742_v42  ;;  %v2525_v62 = vpop.f32.mrf.mxu0 }
 0x14c   :  { %v2507_v63 = vpop.f32.mrf.mxu1 }
 0x14d   :  { %v966_v12 = vpop.f32.mrf.mxu0 }
 0x14e   :  { %v1087_v13 = vpop.f32.mrf.mxu1 }
 0x14f   :  { %v2528_v14 = vpop.f32.mrf.mxu0  ;;  %v1088_v47 = vadd.f32 %v1087_v13, %v946_v56 }
 0x150   :  { %v2549_v18 = vpop.f32.mrf.mxu1 }
 0x152   :  { %v976_v20 = vpop.f32.mrf.mxu0 }
 0x153   :  { %v1093_v21 = vpop.f32.mrf.mxu1 }
 0x154   :  { %v2531_v43 = vpop.f32.mrf.mxu0  ;;  %v1094_v3 = vadd.f32 %v1093_v21, %v956_v59 }
 0x155   :  { %v2552_v23 = vpop.f32.mrf.mxu1 }
 0x156   :  { %v986_v28 = vpop.f32.mrf.mxu0 }
 0x157   :  { %v1099_v30 = vpop.f32.mrf.mxu1 }
 0x158   :  { %v2534_v31 = vpop.f32.mrf.mxu0  ;;  %v1100_v58 = vadd.f32 %v1099_v30, %v966_v12 }
 0x159   :  { %v2555_v32 = vpop.f32.mrf.mxu1 }
 0x15b   :  { %v1195_v36 = vpop.f32.mrf.mxu0 }
 0x15c   :  { %v1105_v37 = vpop.f32.mrf.mxu1  ;;  %v1196_v7 = vadd.f32 %v1195_v36, %v1088_v47 }
 0x15d   :  { %v2576_v39 = vpop.f32.mrf.mxu0  ;;  %v1106_v18 = vadd.f32 %v1105_v37, %v976_v20 }
 0x15e   :  { %v2558_v40 = vpop.f32.mrf.mxu1 }
 0x15f   :  { %v1202_v44 = vpop.f32.mrf.mxu0 }
 0x160   :  { %v1111_v55 = vpop.f32.mrf.mxu1  ;;  %v1203_v41 = vadd.f32 %v1202_v44, %v1094_v3 }
 0x161   :  { %v2579_v45 = vpop.f32.mrf.mxu0  ;;  %v1112_v44 = vadd.f32 %v1111_v55, %v986_v28 }
 0x162   :  { %v2561_v46 = vpop.f32.mrf.mxu1 }
 0x163   :  { %v1209_v48 = vpop.f32.mrf.mxu0 }
 0x164   :  { %v1302_v50 = vpop.f32.mrf.mxu1  ;;  %v1210_v13 = vadd.f32 %v1209_v48, %v1100_v58 }
 0x165   :  { %v2582_v52 = vpop.f32.mrf.mxu0  ;;  %v1303_v22 = vadd.f32 %v1302_v50, %v1196_v7 }
 0x166   :  { %v2603_v15 = vpop.f32.mrf.mxu1 }
 0x168   :  { %v1216_v4 = vpop.f32.mrf.mxu0 }
 0x169   :  { %v1310_v16 = vpop.f32.mrf.mxu1  ;;  %v1217_v31 = vadd.f32 %v1216_v4, %v1106_v18 }
 0x16a   :  { %v2585_v17 = vpop.f32.mrf.mxu0  ;;  %v1311_v54 = vadd.f32 %v1310_v16, %v1203_v41  ;;  %v2852_v16 = vmov 0  }
 0x16b   :  { %v2606_v19 = vpop.f32.mrf.mxu1  ;;  %v1559_v17 = vsel %vm1557_vm2, 1.0, %v2852_v16 }
 0x16c   :  { %v1223_v0 = vpop.f32.mrf.mxu0 }
 0x16d   :  { %v1318_v26 = vpop.f32.mrf.mxu1 }
 0x16e   :  { %v2588_v27 = vpop.f32.mrf.mxu0  ;;  %v1319_v43 = vadd.f32 %v1318_v26, %v1210_v13 }
 0x16f   :  { %v2609_v33 = vpop.f32.mrf.mxu1  ;;  %v3685_v27 = vsub.f32 %v1559_v17, %v1559_v17 }
 0x171   :  { %v1423_v25 = vpop.f32.mrf.mxu0 }
 0x172   :  { %v1326_v35 = vpop.f32.mrf.mxu1  ;;  %v1424_v42 = vadd.f32 %v1423_v25, %v1303_v22 }
 0x173   :  { %v2630_v2 = vpop.f32.mrf.mxu0  ;;  %v1327_v12 = vadd.f32 %v1326_v35, %v1217_v31 }
 0x174   :  { %v2612_v5 = vpop.f32.mrf.mxu1 }
 0x175   :  { %v1429_v9 = vpop.f32.mrf.mxu0  ;;  %v1637_v5 = vand.u32 4294901760, %v3685_v27 }
 0x176   :  { %v1334_v10 = vpop.f32.mrf.mxu1  ;;  %v1430_v62 = vadd.f32 %v1429_v9, %v1311_v54 }
 0x177   :  { %v2633_v29 = vpop.f32.mrf.mxu0 }
 0x178   :  { %v2615_v38 = vpop.f32.mrf.mxu1  ;;  %v1638_v29 = vsub.f32 %v3685_v27, %v1637_v5 }
 0x179   :  { %v1435_v49 = vpop.f32.mrf.mxu0 }
 0x17a   :  { %v1524_v53 = vpop.f32.mrf.mxu1  ;;  %v1436_v39 = vadd.f32 %v1435_v49, %v1319_v43  ;;  %v1639_v54 = vand.u32 4294901760, %v1638_v29 }
 0x17b   :  { %v1525_v8 = vadd.f32 %v1524_v53, %v1424_v42  ;;  %v2636_v57 = vpop.f32.mrf.mxu0 }
 0x17c   :  { %v2657_v60 = vpop.f32.mrf.mxu1 }
 0x17d   :  { %v1552_v56 = vmul.f32 %v1525_v8, %v3666_v6  ;;  %v1441_v63 = vpop.f32.mrf.mxu0  ;;  %v1224_v6 = vadd.f32 %v1223_v0, %v1112_v44 }
 0x17e   :  { %v1530_v14 = vpop.f32.mrf.mxu1  ;;  %v1442_v50 = vadd.f32 %v1441_v63, %v1327_v12 }
 0x17f   :  { %v1531_v59 = vadd.f32 %v1530_v14, %v1430_v62  ;;  %v2639_v21 = vpop.f32.mrf.mxu0  ;;  %v1335_v20 = vadd.f32 %v1334_v10, %v1224_v6  ;;  %v3693_v35 = vand.u32 4294901760, %v1552_v56 }
 0x180   :  { %v2660_v23 = vpop.f32.mrf.mxu1 }
 0x181   :  { %v1553_v32 = vmul.f32 %v1531_v59, %v3668_v24  ;;  %v1447_v36 = vpop.f32.mrf.mxu0  ;;  %v3709_v10 = vsub.f32 %v1552_v56, %v3693_v35 }
 0x182   :  { %v1536_v40 = vpop.f32.mrf.mxu1  ;;  %v1448_v4 = vadd.f32 %v1447_v36, %v1335_v20 }
 0x183   :  { %v2642_v30 = vpop.f32.mrf.mxu0  ;;  %v1537_v45 = vadd.f32 %v1536_v40, %v1436_v39  ;;  %v1698_v49 = vand.u32 4294901760, %v3709_v10 }
 0x184   :  { %v2663_v46 = vpop.f32.mrf.mxu1 }
 0x185   :  { %v1554_v52 = vmul.f32 %v1537_v45, %v3670_v51  ;;  %v3688_v51 = vand.u32 4294901760, %v1553_v32  ;;  %v1699_v62 = vsub.f32 %v3709_v10, %v1698_v49 }
 0x186   :  { %v1542_v48 = vpop.f32.mrf.mxu1 }
 0x187   :  { %v1543_v37 = vadd.f32 %v1542_v48, %v1442_v50  ;;  %v3683_v26 = vand.u32 4294901760, %v1554_v52  ;;  %v3702_v7 = vsub.f32 %v1553_v32, %v3688_v51  ;;  %v1700_v63 = vand.u32 4294901760, %v1699_v62 }
 0x188   :  { %v2666_v15 = vpop.f32.mrf.mxu1 }
 0x189   :  { %v1555_v24 = vmul.f32 %v1543_v37, %v3672_v34  ;;  %v3696_v47 = vsub.f32 %v1554_v52, %v3683_v26  ;;  %v1691_v38 = vand.u32 4294901760, %v3702_v7 }
 0x18a   :  { %v1548_v28 = vpop.f32.mrf.mxu1 }
 0x18b   :  { %v3681_v55 = vand.u32 4294901760, %v1555_v24  ;;  %v1549_v19 = vadd.f32 %v1548_v28, %v1448_v4  ;;  %v1684_v3 = vand.u32 4294901760, %v3696_v47  ;;  %v1692_v58 = vsub.f32 %v3702_v7, %v1691_v38 }
 0x18c   :  { %v2669_v0 = vpop.f32.mrf.mxu1 }
 0x18d   :  { %v1556_v33 = vmul.f32 %v1549_v19, %v3674_v61  ;;  %v3691_v25 = vsub.f32 %v1555_v24, %v3681_v55  ;;  %v1685_v8 = vsub.f32 %v3696_v47, %v1684_v3  ;;  %v1693_v56 = vand.u32 4294901760, %v1692_v58 }
 0x18f   :  { %v1563_v34 = vsel %vm1561_vm3, %v1556_v33, 0  ;;  %v1677_v61 = vand.u32 4294901760, %v3691_v25  ;;  %v1686_v60 = vand.u32 4294901760, %v1685_v8 }
 0x190   :  { %v3698_v2 = vand.u32 4294901760, %v1563_v34 }
 0x191   :  { %v1678_v42 = vsub.f32 %v3691_v25, %v1677_v61 }
 0x192   :  { %v1669_v9 = vsub.f32 %v1563_v34, %v3698_v2  ;;  %2671 = vmatpush3.msra.mxu0 %v3698_v2 }
 0x193   :  { %2672 = vmatprep.subr.mxu0 %v2849_v1  ;;  %v1679_v57 = vand.u32 4294901760, %v1678_v42 }
 0x194   :  { %2673 = vmatpush3.msra.mxu0 %v3681_v55  ;;  %v1670_v22 = vand.u32 4294901760, %v1669_v9 }
 0x195   :  { %2674 = vmatprep.subr.mxu0 %v2849_v1 }
 0x196   :  { %2675 = vmatpush3.msra.mxu0 %v3683_v26  ;;  %v1671_v41 = vsub.f32 %v1669_v9, %v1670_v22 }
 0x197   :  { %2676 = vmatprep.subr.mxu0 %v2849_v1 }
 0x198   :  { %2677 = vmatpush3.msra.mxu0 %v3688_v51  ;;  %v1672_v53 = vand.u32 4294901760, %v1671_v41 }
 0x199   :  { %2678 = vmatprep.subr.mxu0 %v2849_v1 }
 0x19a   :  { %2679 = vmatpush3.msra.mxu0 %v3693_v35  ;;  %2684 = vmatpush3.msra.mxu1 %v1672_v53 }
 0x19b   :  { %2685 = vmatprep.subr.mxu1 %v2849_v1  ;;  %2696 = vmatprep.subr.mxu0 %v2849_v1 }
 0x19c   :  { %2681 = vmatmul.mubr.f32.vlgmr.msra.gmra.mxu0 %v1639_v54  ;;  %2686 = vmatpush3.msra.mxu1 %v1679_v57 }
 0x19d   :  { %2697 = vmatpush3.msra.mxu0 %v1669_v9  ;;  %2687 = vmatprep.subr.mxu1 %v2849_v1 }
 0x19e   :  { %2698 = vmatprep.subr.mxu0 %v2849_v1  ;;  %2688 = vmatpush3.msra.mxu1 %v1686_v60 }
 0x19f   :  { %2699 = vmatpush3.msra.mxu0 %v3691_v25  ;;  %2689 = vmatprep.subr.mxu1 %v2849_v1 }
 0x1a0   :  { %2700 = vmatprep.subr.mxu0 %v2849_v1  ;;  %2690 = vmatpush3.msra.mxu1 %v1693_v56 }
 0x1a1   :  { %2701 = vmatpush3.msra.mxu0 %v3696_v47  ;;  %2691 = vmatprep.subr.mxu1 %v2849_v1 }
 0x1a2   :  { %2702 = vmatprep.subr.mxu0 %v2849_v1  ;;  %2692 = vmatpush3.msra.mxu1 %v1700_v63 }
 0x1a3   :  { %2703 = vmatpush3.msra.mxu0 %v3702_v7  ;;  %2709 = vmatprep.subr.mxu1 %v2849_v1 }
 0x1a4   :  { %2704 = vmatprep.subr.mxu0 %v2849_v1  ;;  %2694 = vmatmul.mubr.msk.f32.vlgmr.msra.gmra.mxu1 %vm1557_vm2, %v2851_v11 }
 0x1a5   :  { %2705 = vmatpush3.msra.mxu0 %v3709_v10  ;;  %2710 = vmatpush3.msra.mxu1 %v3698_v2 }
 0x1a6   :  { %2706 = vmatprep.mubr.msk.f32.mxu0 %vm2850_vm0, %v2849_v1  ;;  %2711 = vmatprep.subr.mxu1 %v2849_v1 }
 0x1a7   :  { %2722 = vmatprep.subr.mxu0 %v2849_v1  ;;  %2707 = vmatmul.mubr.f32.vlgmr.msra.gmra.mxu0 %v3685_v27 }
 0x1a8   :  { %2712 = vmatpush3.msra.mxu1 %v3681_v55  ;;  %2723 = vmatpush3.msra.mxu0 %v1670_v22 }
 0x1a9   :  { %2713 = vmatprep.subr.mxu1 %v2849_v1  ;;  %2724 = vmatprep.subr.mxu0 %v2849_v1 }
 0x1aa   :  { %2714 = vmatpush3.msra.mxu1 %v3683_v26  ;;  %2725 = vmatpush3.msra.mxu0 %v1677_v61 }
 0x1ab   :  { %2715 = vmatprep.subr.mxu1 %v2849_v1  ;;  %2726 = vmatprep.subr.mxu0 %v2849_v1 }
 0x1ac   :  { %2716 = vmatpush3.msra.mxu1 %v3688_v51  ;;  %2727 = vmatpush3.msra.mxu0 %v1684_v3 }
 0x1ad   :  { %2717 = vmatprep.subr.mxu1 %v2849_v1  ;;  %2728 = vmatprep.subr.mxu0 %v2849_v1 }
 0x1ae   :  { %2718 = vmatpush3.msra.mxu1 %v3693_v35  ;;  %2729 = vmatpush3.msra.mxu0 %v1691_v38 }
 0x1af   :  { %2719 = vmatprep.mubr.msk.f32.mxu1 %vm2850_vm0, %v2849_v1  ;;  %2730 = vmatprep.subr.mxu0 %v2849_v1 }
 0x1b0   :  { %2735 = vmatprep.subr.mxu1 %v2849_v1  ;;  %2720 = vmatmul.mubr.f32.vlgmr.msra.gmra.mxu1 %v1637_v5 }
 0x1b1   :  { %2731 = vmatpush3.msra.mxu0 %v1698_v49  ;;  %2736 = vmatpush3.msra.mxu1 %v3698_v2 }
 0x1b2   :  { %2737 = vmatprep.subr.mxu1 %v2849_v1  ;;  %2732 = vmatprep.mubr.msk.f32.mxu0 %vm2850_vm0, %v2849_v1 }
 0x1b3   :  { %2738 = vmatpush3.msra.mxu1 %v3681_v55  ;;  %2733 = vmatmul.mubr.msk.f32.vlgmr.msra.gmra.mxu0 %vm1557_vm2, %v2851_v11 }
 0x1b4   :  { %2739 = vmatprep.subr.mxu1 %v2849_v1  ;;  %2745 = vmatprep.mubr.msk.f32.mxu1 %vm2850_vm0, %v2849_v1 }
 0x1b5   :  { %2740 = vmatpush3.msra.mxu1 %v3683_v26 }
 0x1b6   :  { %2741 = vmatprep.subr.mxu1 %v2849_v1 }
 0x1b7   :  { %2742 = vmatpush3.msra.mxu1 %v3688_v51 }
 0x1b8   :  { %2743 = vmatprep.subr.mxu1 %v2849_v1 }
 0x1b9   :  { %2744 = vmatpush3.msra.mxu1 %v3693_v35 }
 0x1ba   :  { %2746 = vmatmul.mubr.msk.f32.vlgmr.msra.gmra.mxu1 %vm1557_vm2, %v2851_v11 }
 0x25c   :  { %v1641_v13 = vpop.f32.mrf.mxu0 }
 0x25e   :  { %v2682_v14 = vpop.f32.mrf.mxu0 }
 0x264   :  { %v1737_v18 = vpop.f32.mrf.mxu1 }
 0x265   :  { %v1738_v23 = vadd.f32 %v1737_v18, %v1641_v13 }
 0x266   :  { %v2695_v59 = vpop.f32.mrf.mxu1 }
 0x267   :  { %v1819_v21 = vpop.f32.mrf.mxu0 }
 0x268   :  { %v1820_v36 = vadd.f32 %v1819_v21, %v1738_v23 }
 0x269   :  { %v2708_v43 = vpop.f32.mrf.mxu0 }
 0x270   :  { %v1897_v31 = vpop.f32.mrf.mxu1 }
 0x271   :  { %v1898_v40 = vadd.f32 %v1897_v31, %v1820_v36 }
 0x272   :  { %v2721_v32 = vpop.f32.mrf.mxu1 }
 0x273   :  { %v1983_v39 = vpop.f32.mrf.mxu0 }
 0x274   :  { %v1984_v12 = vadd.f32 %v1983_v39, %v1898_v40 }
 0x275   :  { %v2734_v44 = vpop.f32.mrf.mxu0 }
 0x27a   :  { %v2059_v1 = vpop.f32.mrf.mxu1 }
 0x27b   :  { %v2060_v30 = vadd.f32 %v2059_v1, %v1984_v12 }
 0x27c   :  { %v2747_v45 = vpop.f32.mrf.mxu1 }
 0x27d   :  { %v2063_v11 = vmax.f32 %v2060_v30, 0.0 }
 0x27f   :  { %2064 = vst [vmem:[#allocation8] sm:$0x1] %v2063_v11 }
 0x280   :  { %2829 = shalt.err (!%p2826_p5)
}
 0x281   :  { %2074 = dma.vmem_to_hbm [thread:$0]  %s2072_s6, 16, %s3790_s4, [#allocation4]  }
 0x282   :  { %2842 = dma.done.wait [#allocation4], 16  }
 0x283   :  { %2843 = vsyncadd [#allocation4], 4294967280 }
 0x284   :  { %2078 = vsyncpa [#allocation3], 1 }
 0x285   :  { %2079 = vsyncpa [#allocation6], 1 }
 0x286   :  { %2080 = vsyncpa [#allocation4], 1 }

</bundles_post_ra>
